<compile_context>
chip_gen: v7x
topology: tpu7x:2x2x1
jax: 0.10.0
libtpu: 0.0.40
codegen_flags: <defaults>
</compile_context>

<pallas_src>
import functools

import jax
import jax.numpy as jnp
from jax import lax
from jax.experimental import pallas as pl
from jax.experimental.pallas import tpu as pltpu

EPS = 1e-7          # `self.smooth` in the PyTorch module
LANES = 128


# ---------------------------------------------------------------------------
# Hardware-dependent tuning knobs (computed once, lazily).
# ---------------------------------------------------------------------------
@functools.lru_cache(maxsize=None)
def _device_kind():
    try:
        return jax.devices()[0].device_kind.lower()
    except Exception:  # pragma: no cover - CPU fallback / interpret mode
        return "tpu v6e"


@functools.lru_cache(maxsize=None)
def _tpu_generation():
    kind = _device_kind()
    if "v7" in kind or "7x" in kind:
        return 7
    for gen in (6, 5, 4, 3, 2):
        if f"v{gen}" in kind:
            return gen
    return 6


@functools.lru_cache(maxsize=None)
def _num_split_cores():
    # Split the reduction grid across TensorCores only on multi-TC chips;
    # on single-TC v5e/v6e the split would only add a clamped duplicate block.
    kind = _device_kind()
    if "v7" in kind or "7x" in kind:
        return 2
    if "v4" in kind:
        return 2
    if "v5" in kind and "lite" not in kind and "5e" not in kind:   # v5p
        return 2
    return 1


@functools.lru_cache(maxsize=None)
def _target_block_bytes():
    # Per-input, per-pipeline-buffer block size.
    #  v6e/v7x: 4 MiB (2 in x 2 buf x 4 MiB = 16 MiB live < 32 MiB scoped VMEM)
    #  v5e/v4 : 2 MiB (8 MiB live < 16 MiB default scoped VMEM)
    return (4 << 20) if _tpu_generation() >= 6 else (2 << 20)


def _sublane_multiple(dtype):
    return max(8, 32 // jnp.dtype(dtype).itemsize)


def _round_up(x, m):
    return ((x + m - 1) // m) * m


# ---------------------------------------------------------------------------
# softmax=False: flat dice reduction over a lane-dense (rows, 128) view.
# ---------------------------------------------------------------------------
def _dice_flat_kernel(pred_ref, targ_ref, out_i_ref, out_u_ref,
                      acc_i_ref, acc_u_ref,
                      *, block_rows, chunk_rows, steps_per_core, num_blocks,
                      total_rows, ncores):
    c = pl.program_id(0)        # TensorCore-split axis ("parallel")
    i = pl.program_id(1)        # reduction axis ("arbitrary")

    @pl.when(i == 0)
    def _():
        acc_i_ref[...] = jnp.zeros_like(acc_i_ref)
        acc_u_ref[...] = jnp.zeros_like(acc_u_ref)

    nchunks = block_rows // chunk_rows
    zero = jnp.zeros((chunk_rows, LANES), jnp.float32)

    def accumulate(masked):
        block_start = (c * steps_per_core + i) * block_rows

        def body(k, carry):
            ai, au = carry
            r0 = pl.multiple_of(k * chunk_rows, chunk_rows)
            p = pred_ref[pl.ds(r0, chunk_rows), :].astype(jnp.float32)
            t = targ_ref[pl.ds(r0, chunk_rows), :].astype(jnp.float32)
            if masked:
                row = lax.broadcasted_iota(jnp.int32, p.shape, 0)
                valid = block_start + r0 + row < total_rows
                p = jnp.where(valid, p, 0.0)
                t = jnp.where(valid, t, 0.0)
            return ai + p * t, au + (p + t)

        # Partial sums stay in vector registers for the whole block; the VMEM
        # accumulator is touched once per grid step (2 vreg loads + 2 stores).
        ai, au = lax.fori_loop(0, nchunks, body, (zero, zero),
                               unroll=min(8, nchunks))
        acc_i_ref[...] += ai
        acc_u_ref[...] += au

    has_tail = (total_rows % block_rows) != 0
    has_dup = (steps_per_core * ncores) != num_blocks
    logical = c * steps_per_core + i
    last = num_blocks - 1

    if has_tail:
        if num_blocks == 1 and not has_dup:
            accumulate(True)
        else:
            @pl.when(logical < last)
            def _():
                accumulate(False)

            @pl.when(logical == last)
            def _():
                accumulate(True)
    elif has_dup:
        @pl.when(logical <= last)
        def _():
            accumulate(False)
    else:
        accumulate(False)

    @pl.when(i == pl.num_programs(1) - 1)
    def _():
        out_i_ref[...] = acc_i_ref[...].reshape(1, chunk_rows, LANES)
        out_u_ref[...] = acc_u_ref[...].reshape(1, chunk_rows, LANES)


def _dice_partials_flat(pred, target):
    p = pred.reshape(-1)
    t = target.reshape(-1)
    n = p.shape[0]

    sub = max(_sublane_multiple(pred.dtype), _sublane_multiple(target.dtype))
    itemsize = max(jnp.dtype(pred.dtype).itemsize,
                   jnp.dtype(target.dtype).itemsize)

    # Pad (<= sub*128 zeros) so the (rows, 128) view is sublane/lane aligned;
    # zeros change neither the intersection nor the union.
    n_pad = _round_up(n, sub * LANES)
    if n_pad != n:
        p = jnp.pad(p, (0, n_pad - n))
        t = jnp.pad(t, (0, n_pad - n))
    rows = n_pad // LANES
    p2 = p.reshape(rows, LANES)
    t2 = t.reshape(rows, LANES)

    ncores = _num_split_cores()
    block_rows = _target_block_bytes() // (LANES * itemsize)
    block_rows = max(sub, (block_rows // sub) * sub)
    block_rows = min(block_rows, rows)              # rows is a multiple of sub
    num_blocks = pl.cdiv(rows, block_rows)
    steps_per_core = pl.cdiv(num_blocks, ncores)

    def in_map(c, i):
        # Out-of-range steps of the core split re-read the last block; their
        # contribution is skipped/masked inside the kernel.
        return (jnp.minimum(c * steps_per_core + i, num_blocks - 1), 0)

    kernel = functools.partial(
        _dice_flat_kernel,
        block_rows=block_rows, chunk_rows=sub, steps_per_core=steps_per_core,
        num_blocks=num_blocks, total_rows=rows, ncores=ncores)

    out_i, out_u = pl.pallas_call(
        kernel,
        out_shape=(jax.ShapeDtypeStruct((ncores, sub, LANES), jnp.float32),
                   jax.ShapeDtypeStruct((ncores, sub, LANES), jnp.float32)),
        grid_spec=pltpu.PrefetchScalarGridSpec(
            num_scalar_prefetch=0,
            grid=(ncores, steps_per_core),
            in_specs=[pl.BlockSpec((block_rows, LANES), in_map),
                      pl.BlockSpec((block_rows, LANES), in_map)],
            out_specs=[pl.BlockSpec((1, sub, LANES), lambda c, i: (c, 0, 0)),
                       pl.BlockSpec((1, sub, LANES), lambda c, i: (c, 0, 0))],
            scratch_shapes=[pltpu.VMEM((sub, LANES), jnp.float32),
                            pltpu.VMEM((sub, LANES), jnp.float32)],
        ),
        compiler_params=pltpu.CompilerParams(
            dimension_semantics=("parallel", "arbitrary")),
    )(p2, t2)
    return jnp.sum(out_i), jnp.sum(out_u)


# ---------------------------------------------------------------------------
# softmax=True: fused channel softmax + dice reduction on (B, C, H*W).
# ---------------------------------------------------------------------------
def _dice_softmax_kernel(pred_ref, targ_ref, out_i_ref, out_t_ref,
                         acc_i_ref, acc_t_ref,
                         *, hw_tile, hw_total, steps_per_core, n_hw_blocks,
                         ncores, nbatch):
    cc = pl.program_id(0)       # TensorCore-split axis ("parallel")
    bb = pl.program_id(1)       # batch ("arbitrary", accumulated across)
    jj = pl.program_id(2)       # HW blocks ("arbitrary")

    @pl.when((bb == 0) & (jj == 0))
    def _():
        acc_i_ref[...] = jnp.zeros_like(acc_i_ref)
        acc_t_ref[...] = jnp.zeros_like(acc_t_ref)

    hw_block = cc * steps_per_core + jj

    def accumulate(masked):
        x = pred_ref[...].astype(jnp.float32)      # (1, C, T)
        t = targ_ref[...].astype(jnp.float32)      # (1, C, T)
        if masked:
            col = lax.broadcasted_iota(jnp.int32, x.shape, 2)
            valid = hw_block * hw_tile + col < hw_total
            x = jnp.where(valid, x, 0.0)
            t = jnp.where(valid, t, 0.0)
        # Fused F.softmax(pred, dim=1), algebraically folded:
        #   sum_c softmax_c * t_c = (sum_c e_c * t_c) * reciprocal(sum_c e_c)
        m = jnp.max(x, axis=1, keepdims=True)
        e = jnp.exp(x - m)
        inv = pl.reciprocal(jnp.sum(e, axis=1, keepdims=True), approx=True)
        inter = jnp.sum(e * t, axis=1, keepdims=True) * inv     # (1, 1, T)
        tsum = jnp.sum(t, axis=1, keepdims=True)                # (1, 1, T)
        # Padded columns have x == t == 0 -> inter == tsum == 0.
        acc_i_ref[...] += inter
        acc_t_ref[...] += tsum

    has_tail = (hw_total % hw_tile) != 0
    has_dup = (steps_per_core * ncores) != n_hw_blocks
    last = n_hw_blocks - 1

    if has_tail:
        if n_hw_blocks == 1 and not has_dup:
            accumulate(True)
        else:
            @pl.when(hw_block < last)
            def _():
                accumulate(False)

            @pl.when(hw_block == last)
            def _():
                accumulate(True)
    elif has_dup:
        @pl.when(hw_block <= last)
        def _():
            accumulate(False)
    else:
        accumulate(False)

    @pl.when((bb == nbatch - 1) & (jj == pl.num_programs(2) - 1))
    def _():
        out_i_ref[...] = jnp.full((1, 1, 1), jnp.sum(acc_i_ref[...]),
                                  jnp.float32)
        out_t_ref[...] = jnp.full((1, 1, 1), jnp.sum(acc_t_ref[...]),
                                  jnp.float32)


def _dice_partials_softmax(pred, target):
    b, ch = pred.shape[0], pred.shape[1]
    p3 = pred.reshape(b, ch, -1)
    t3 = target.reshape(b, ch, -1)
    hw = p3.shape[2]

    itemsize = max(jnp.dtype(pred.dtype).itemsize,
                   jnp.dtype(target.dtype).itemsize)
    sub = max(_sublane_multiple(pred.dtype), _sublane_multiple(target.dtype))
    c_pad = _round_up(ch, sub)                # account for sublane padding

    ncores = _num_split_cores()
    target_bytes = max(_target_block_bytes() // 4, 1 << 19)
    hw_tile = target_bytes // (c_pad * itemsize)
    hw_tile = max(LANES, (hw_tile // LANES) * LANES)
    hw_tile = min(hw_tile, _round_up(hw, LANES))
    n_hw_blocks = pl.cdiv(hw, hw_tile)
    steps_per_core = pl.cdiv(n_hw_blocks, ncores)

    def in_map(cc, bb, jj):
        return (bb, 0, jnp.minimum(cc * steps_per_core + jj, n_hw_blocks - 1))

    kernel = functools.partial(
        _dice_softmax_kernel, hw_tile=hw_tile, hw_total=hw,
        steps_per_core=steps_per_core, n_hw_blocks=n_hw_blocks,
        ncores=ncores, nbatch=b)

    out_i, out_t = pl.pallas_call(
        kernel,
        out_shape=(jax.ShapeDtypeStruct((ncores, 1, 1), jnp.float32),
                   jax.ShapeDtypeStruct((ncores, 1, 1), jnp.float32)),
        grid_spec=pltpu.PrefetchScalarGridSpec(
            num_scalar_prefetch=0,
            grid=(ncores, b, steps_per_core),
            in_specs=[pl.BlockSpec((1, ch, hw_tile), in_map),
                      pl.BlockSpec((1, ch, hw_tile), in_map)],
            out_specs=[pl.BlockSpec((1, 1, 1), lambda cc, bb, jj: (cc, 0, 0)),
                       pl.BlockSpec((1, 1, 1), lambda cc, bb, jj: (cc, 0, 0))],
            scratch_shapes=[pltpu.VMEM((1, 1, hw_tile), jnp.float32),
                            pltpu.VMEM((1, 1, hw_tile), jnp.float32)],
        ),
        compiler_params=pltpu.CompilerParams(
            dimension_semantics=("parallel", "arbitrary", "arbitrary")),
    )(p3, t3)
    return jnp.sum(out_i), jnp.sum(out_t), float(b * hw)


# ---------------------------------------------------------------------------
# Public wrapper: matches DiceLoss(softmax=...).forward(pred, target)
# ---------------------------------------------------------------------------
@functools.partial(jax.jit, static_argnames=("softmax",))
def dice_loss(pred, target, softmax=False):
    if softmax:
        inter, t_total, n_pix = _dice_partials_softmax(pred, target)
        # sum_c softmax == 1 per pixel, so the softmax term of `union`
        # is exactly the pixel count (rounding-level difference only).
        union = t_total + n_pix
    else:
        inter, union = _dice_partials_flat(pred, target)
    return 1.0 - (2.0 * inter + EPS) / (union + EPS)


if __name__ == "__main__":
    key = jax.random.PRNGKey(0)
    k1, k2, k3, k4 = jax.random.split(key, 4)

    # NCHW inputs, as the PyTorch module would receive them.
    pred = jax.random.uniform(k1, (2, 4, 16, 16), dtype=jnp.float32)
    target = (jax.random.uniform(k2, (2, 4, 16, 16)) > 0.5).astype(jnp.float32)

    # ---- softmax=False (module default) ----
    loss = dice_loss(pred, target, softmax=False)
    jax.block_until_ready(loss)
    pf, tf = pred.reshape(-1), target.reshape(-1)
    ref = 1.0 - (2.0 * jnp.sum(pf * tf) + EPS) / (jnp.sum(pf) + jnp.sum(tf) + EPS)
    assert jnp.allclose(loss, ref, rtol=1e-5, atol=1e-5), (loss, ref)

    # non-128-aligned element count (exercises the lane/sublane pad path)
    pred2 = jax.random.uniform(k3, (3, 5, 7, 9), dtype=jnp.float32)
    target2 = (jax.random.uniform(k4, (3, 5, 7, 9)) > 0.5).astype(jnp.float32)
    loss2 = dice_loss(pred2, target2, softmax=False)
    jax.block_until_ready(loss2)
    pf2, tf2 = pred2.reshape(-1), target2.reshape(-1)
    ref2 = 1.0 - (2.0 * jnp.sum(pf2 * tf2) + EPS) / (
        jnp.sum(pf2) + jnp.sum(tf2) + EPS)
    assert jnp.allclose(loss2, ref2, rtol=1e-5, atol=1e-5), (loss2, ref2)

    # ---- softmax=True (fused channel softmax + dice) ----
    loss_sm = dice_loss(pred, target, softmax=True)
    jax.block_until_ready(loss_sm)
    psm = jax.nn.softmax(pred, axis=1).reshape(-1)
    ref_sm = 1.0 - (2.0 * jnp.sum(psm * tf) + EPS) / (
        jnp.sum(psm) + jnp.sum(tf) + EPS)
    # approx reciprocal + sum(softmax)==1 shortcut -> rounding-level deltas
    assert jnp.allclose(loss_sm, ref_sm, rtol=5e-3, atol=1e-3), (loss_sm, ref_sm)

    print("KERNEL_OK")
</pallas_src>

<mosaic_0001>
module attributes {stable_mosaic.version = 11 : i64} {
  func.func @_dice_flat_kernel(%arg0: i32, %arg1: i32, %arg2: memref<16x128xf32, #tpu.memory_space<vmem>>, %arg3: memref<16x128xf32, #tpu.memory_space<vmem>>, %arg4: memref<1x8x128xf32, #tpu.memory_space<vmem>>, %arg5: memref<1x8x128xf32, #tpu.memory_space<vmem>>, %arg6: memref<8x128xf32, #tpu.memory_space<vmem>>, %arg7: memref<8x128xf32, #tpu.memory_space<vmem>>) attributes {dimension_semantics = [#tpu.dimension_semantics<parallel>, #tpu.dimension_semantics<arbitrary>], iteration_bounds = array<i64: 1, 1>, scalar_prefetch = 0 : i64, scratch_operands = 2 : i64, tpu.core_type = #tpu.core_type<tc>, window_params = [{transform_indices = @transform_0, window_bounds = array<i64: 16, 128>}, {transform_indices = @transform_1, window_bounds = array<i64: 16, 128>}, {transform_indices = @transform_2, window_bounds = array<i64: 1, 8, 128>}, {transform_indices = @transform_3, window_bounds = array<i64: 1, 8, 128>}]} {
    %c0_i32 = arith.constant 0 : i32
    %0 = arith.cmpi eq, %arg1, %c0_i32 : i32
    %1 = arith.extui %0 : i1 to i32
    %c0_i32_0 = arith.constant 0 : i32
    %2 = arith.cmpi ne, %1, %c0_i32_0 : i32
    scf.if %2 {
      %cst_16 = arith.constant 0.000000e+00 : f32
      %33 = vector.broadcast %cst_16 : f32 to vector<8x128xf32>
      %c0_17 = arith.constant 0 : index
      %c0_18 = arith.constant 0 : index
      %34 = vector.load %arg6[%c0_17, %c0_18] : memref<8x128xf32, #tpu.memory_space<vmem>>, vector<8x128xf32>
      tpu.vector_store %arg6[%c0_17, %c0_18], %33 {strides = array<i32>} : memref<8x128xf32, #tpu.memory_space<vmem>>, vector<8x128xf32>,
      %cst_19 = arith.constant 0.000000e+00 : f32
      %35 = vector.broadcast %cst_19 : f32 to vector<8x128xf32>
      %c0_20 = arith.constant 0 : index
      %c0_21 = arith.constant 0 : index
      %36 = vector.load %arg7[%c0_20, %c0_21] : memref<8x128xf32, #tpu.memory_space<vmem>>, vector<8x128xf32>
      tpu.vector_store %arg7[%c0_20, %c0_21], %35 {strides = array<i32>} : memref<8x128xf32, #tpu.memory_space<vmem>>, vector<8x128xf32>,
    } else {
    }
    %cst = arith.constant 0.000000e+00 : f32
    %3 = vector.broadcast %cst : f32 to vector<8x128xf32>
    %c0_i32_1 = arith.constant 0 : i32
    %c8_i32 = arith.constant 8 : i32
    %4 = arith.muli %c0_i32_1, %c8_i32 : i32
    %5 = tpu.assume_multiple %4, 8 : i32
    %6 = arith.index_cast %5 : i32 to index
    %c0 = arith.constant 0 : index
    %7 = vector.load %arg2[%6, %c0] : memref<16x128xf32, #tpu.memory_space<vmem>>, vector<8x128xf32>
    %8 = arith.index_cast %5 : i32 to index
    %c0_2 = arith.constant 0 : index
    %9 = vector.load %arg3[%8, %c0_2] : memref<16x128xf32, #tpu.memory_space<vmem>>, vector<8x128xf32>
    %10 = arith.mulf %7, %9 : vector<8x128xf32>
    %11 = arith.addf %3, %10 : vector<8x128xf32>
    %12 = arith.addf %7, %9 : vector<8x128xf32>
    %13 = arith.addf %3, %12 : vector<8x128xf32>
    %c1_i32 = arith.constant 1 : i32
    %c8_i32_3 = arith.constant 8 : i32
    %14 = arith.muli %c1_i32, %c8_i32_3 : i32
    %15 = tpu.assume_multiple %14, 8 : i32
    %16 = arith.index_cast %15 : i32 to index
    %c0_4 = arith.constant 0 : index
    %17 = vector.load %arg2[%16, %c0_4] : memref<16x128xf32, #tpu.memory_space<vmem>>, vector<8x128xf32>
    %18 = arith.index_cast %15 : i32 to index
    %c0_5 = arith.constant 0 : index
    %19 = vector.load %arg3[%18, %c0_5] : memref<16x128xf32, #tpu.memory_space<vmem>>, vector<8x128xf32>
    %20 = arith.mulf %17, %19 : vector<8x128xf32>
    %21 = arith.addf %11, %20 : vector<8x128xf32>
    %22 = arith.addf %17, %19 : vector<8x128xf32>
    %23 = arith.addf %13, %22 : vector<8x128xf32>
    %c2_i32 = arith.constant 2 : i32
    %c0_6 = arith.constant 0 : index
    %c0_7 = arith.constant 0 : index
    %24 = vector.load %arg6[%c0_6, %c0_7] : memref<8x128xf32, #tpu.memory_space<vmem>>, vector<8x128xf32>
    %25 = arith.addf %24, %21 : vector<8x128xf32>
    %c0_8 = arith.constant 0 : index
    %c0_9 = arith.constant 0 : index
    %26 = vector.load %arg6[%c0_8, %c0_9] : memref<8x128xf32, #tpu.memory_space<vmem>>, vector<8x128xf32>
    tpu.vector_store %arg6[%c0_8, %c0_9], %25 {strides = array<i32>} : memref<8x128xf32, #tpu.memory_space<vmem>>, vector<8x128xf32>,
    %c0_10 = arith.constant 0 : index
    %c0_11 = arith.constant 0 : index
    %27 = vector.load %arg7[%c0_10, %c0_11] : memref<8x128xf32, #tpu.memory_space<vmem>>, vector<8x128xf32>
    %28 = arith.addf %27, %23 : vector<8x128xf32>
    %c0_12 = arith.constant 0 : index
    %c0_13 = arith.constant 0 : index
    %29 = vector.load %arg7[%c0_12, %c0_13] : memref<8x128xf32, #tpu.memory_space<vmem>>, vector<8x128xf32>
    tpu.vector_store %arg7[%c0_12, %c0_13], %28 {strides = array<i32>} : memref<8x128xf32, #tpu.memory_space<vmem>>, vector<8x128xf32>,
    %c0_i32_14 = arith.constant 0 : i32
    %30 = arith.cmpi eq, %arg1, %c0_i32_14 : i32
    %31 = arith.extui %30 : i1 to i32
    %c0_i32_15 = arith.constant 0 : i32
    %32 = arith.cmpi ne, %31, %c0_i32_15 : i32
    scf.if %32 {
      %c0_16 = arith.constant 0 : index
      %c0_17 = arith.constant 0 : index
      %33 = vector.load %arg6[%c0_16, %c0_17] : memref<8x128xf32, #tpu.memory_space<vmem>>, vector<8x128xf32>
      %34 = vector.shape_cast %33 : vector<8x128xf32> to vector<1x8x128xf32>
      %c0_18 = arith.constant 0 : index
      %c0_19 = arith.constant 0 : index
      %c0_20 = arith.constant 0 : index
      %35 = vector.load %arg4[%c0_18, %c0_19, %c0_20] : memref<1x8x128xf32, #tpu.memory_space<vmem>>, vector<1x8x128xf32>
      tpu.vector_store %arg4[%c0_18, %c0_19, %c0_20], %34 {strides = array<i32>} : memref<1x8x128xf32, #tpu.memory_space<vmem>>, vector<1x8x128xf32>,
      %c0_21 = arith.constant 0 : index
      %c0_22 = arith.constant 0 : index
      %36 = vector.load %arg7[%c0_21, %c0_22] : memref<8x128xf32, #tpu.memory_space<vmem>>, vector<8x128xf32>
      %37 = vector.shape_cast %36 : vector<8x128xf32> to vector<1x8x128xf32>
      %c0_23 = arith.constant 0 : index
      %c0_24 = arith.constant 0 : index
      %c0_25 = arith.constant 0 : index
      %38 = vector.load %arg5[%c0_23, %c0_24, %c0_25] : memref<1x8x128xf32, #tpu.memory_space<vmem>>, vector<1x8x128xf32>
      tpu.vector_store %arg5[%c0_23, %c0_24, %c0_25], %37 {strides = array<i32>} : memref<1x8x128xf32, #tpu.memory_space<vmem>>, vector<1x8x128xf32>,
    } else {
    }
    return
  }
  func.func @transform_0(%arg0: i32, %arg1: i32) -> (i32, i32) {
    %c1_i32 = arith.constant 1 : i32
    %0 = arith.muli %arg0, %c1_i32 : i32
    %1 = arith.addi %0, %arg1 : i32
    %c0_i32 = arith.constant 0 : i32
    %2 = arith.minsi %1, %c0_i32 : i32
    %c0_i32_0 = arith.constant 0 : i32
    %c0_i32_1 = arith.constant 0 : i32
    return %2, %c0_i32_0 : i32, i32
  }
  func.func @transform_1(%arg0: i32, %arg1: i32) -> (i32, i32) {
    %c1_i32 = arith.constant 1 : i32
    %0 = arith.muli %arg0, %c1_i32 : i32
    %1 = arith.addi %0, %arg1 : i32
    %c0_i32 = arith.constant 0 : i32
    %2 = arith.minsi %1, %c0_i32 : i32
    %c0_i32_0 = arith.constant 0 : i32
    %c0_i32_1 = arith.constant 0 : i32
    return %2, %c0_i32_0 : i32, i32
  }
  func.func @transform_2(%arg0: i32, %arg1: i32) -> (i32, i32, i32) {
    %c0_i32 = arith.constant 0 : i32
    %c0_i32_0 = arith.constant 0 : i32
    %c0_i32_1 = arith.constant 0 : i32
    return %arg0, %c0_i32, %c0_i32_0 : i32, i32, i32
  }
  func.func @transform_3(%arg0: i32, %arg1: i32) -> (i32, i32, i32) {
    %c0_i32 = arith.constant 0 : i32
    %c0_i32_0 = arith.constant 0 : i32
    %c0_i32_1 = arith.constant 0 : i32
    return %arg0, %c0_i32, %c0_i32_0 : i32, i32, i32
  }
}

</mosaic_0001>

<bundles_post_ra>
// kernel: dice_loss.1
= control target key start
LH: loop header
LB: loop body
LE: loop exit
PB: predicated region body
PF: predicated region fallthrough
CT: control target
= control target key end

     0   :  { %s170_s0 = inlined_call_operand.vmem [shape: f32[16,128], index: 0, kind: input, shape index: {}]   ;;  %s171_s1 = inlined_call_operand.vmem [shape: f32[16,128], index: 1, kind: input, shape index: {}]   ;;  %s172_s2 = inlined_call_operand.vmem [shape: f32[1,8,128], index: 2, kind: output, shape index: {0}]   ;;  %s173_s3 = inlined_call_operand.vmem [shape: f32[1,8,128], index: 3, kind: output, shape index: {1}]  }
   0x1   :  { %v83_v0 = vld [vmem:[%s170_s0] sm:$0xff]  ;;  %v130_v2 = vld [vmem:[%s170_s0 + $0x8] sm:$0xff] }
   0x2   :  { %v84_v1 = vld [vmem:[%s171_s1] sm:$0xff]  ;;  %v131_v4 = vld [vmem:[%s171_s1 + $0x8] sm:$0xff] }
   0x3   :  { %v85_v3 = vmul.f32 %v84_v1, %v83_v0  ;;  %v87_v5 = vadd.f32 %v84_v1, %v83_v0  ;;  %v93_v6 = vmul.f32 %v131_v4, %v130_v2  ;;  %v95_v7 = vadd.f32 %v131_v4, %v130_v2 }
   0x5   :  { %v94_v8 = vadd.f32 %v93_v6, %v85_v3  ;;  %v96_v9 = vadd.f32 %v95_v7, %v87_v5 }
   0x7   :  { %107 = vst [vmem:[%s172_s2] sm:$0xff] %v94_v8  ;;  %109 = vst [vmem:[%s173_s3] sm:$0xff] %v96_v9 }

</bundles_post_ra>
